<compile_context>
chip_gen: v7x
topology: tpu7x:2x2x1
jax: 0.10.0
libtpu: 0.0.40
codegen_flags: <defaults>
</compile_context>

<pallas_src>
import functools

import jax
import jax.numpy as jnp
from jax.experimental import pallas as pl
from jax.experimental.pallas import tpu as pltpu

LN_EPS = 1e-5


def convlayer_kernel(x_ref, w1_ref, b1_ref, w2_ref, b2_ref, g_ref, bt_ref,
                     o_ref, xcat_ref, hcat_ref,
                     *, bblk, seq_len, cin, dff, mxu_dtype):
    L = seq_len

    # ---- conv1: build [x[t-1] | x[t] | x[t+1]] (K-fused) into VMEM scratch ----
    for b in range(bblk):                       # static, tiny trip count
        xb = x_ref[b]                           # (L, Cin), f32
        r = slice(b * L, (b + 1) * L)
        xcat_ref[r, 0:cin] = pltpu.roll(xb, shift=1, axis=0)          # x[t-1]
        xcat_ref[r, cin:2 * cin] = xb                                  # x[t]
        xcat_ref[r, 2 * cin:3 * cin] = pltpu.roll(xb, shift=L - 1, axis=0)  # x[t+1]

    x_cat = xcat_ref[...]                       # (Bblk*L, 3*Cin)
    h = jnp.dot(x_cat.astype(mxu_dtype), w1_ref[...],
                preferred_element_type=jnp.float32)
    h = jnp.maximum(h + b1_ref[...], 0.0)       # bias + ReLU in f32 (v5e-safe)

    # ---- conv2: same K-fused construction from the hidden activations ----
    hcat_ref[:, dff:2 * dff] = h                # center tap, full-width store
    for b in range(bblk):
        r = slice(b * L, (b + 1) * L)
        hb = hcat_ref[r, dff:2 * dff]           # (L, d_ff), f32
        hcat_ref[r, 0:dff] = pltpu.roll(hb, shift=1, axis=0)           # h[t-1]
        hcat_ref[r, 2 * dff:3 * dff] = pltpu.roll(hb, shift=L - 1, axis=0)  # h[t+1]

    h_cat = hcat_ref[...]                       # (Bblk*L, 3*d_ff)
    y = jnp.dot(h_cat.astype(mxu_dtype), w2_ref[...],
                preferred_element_type=jnp.float32)
    y = y + b2_ref[...]                         # (Bblk*L, d_out), f32

    # ---- LayerNorm over channels (biased variance, eps=1e-5), f32 ----
    mean = jnp.mean(y, axis=-1, keepdims=True)
    var = jnp.mean((y - mean) ** 2, axis=-1, keepdims=True)
    y = (y - mean) * jax.lax.rsqrt(var + LN_EPS)
    o_ref[...] = y * g_ref[...] + bt_ref[...]


def convlayer_forward(x, w1, b1, w2, b2, gamma, beta,
                      *, batch_block=None, mxu_dtype=jnp.float32):
    """x: (B, L, d_model) f32; w1: (3, d_model, d_ff); w2: (3, d_ff, d_out).

    Returns (B, L, d_out) f32.  `batch_block` batch elements are folded into the
    matmul M dimension per grid step (default: the whole batch -> grid of 1; on
    v7x prefer >= 2 grid steps so both TensorCores are used).
    """
    B, L, d_model = x.shape
    d_ff = w1.shape[2]
    d_out = w2.shape[2]
    if batch_block is None:
        batch_block = B
    assert B % batch_block == 0, "batch must divide evenly into batch_block"
    n_blocks = B // batch_block

    # Pre-flatten tap-major weights to a single contraction dim (done once,
    # wrapper-side, not per grid step).  Tap order matches [prev | x | nxt].
    w1cat = w1.reshape(3 * d_model, d_ff).astype(mxu_dtype)
    w2cat = w2.reshape(3 * d_ff, d_out).astype(mxu_dtype)

    kernel = functools.partial(
        convlayer_kernel, bblk=batch_block, seq_len=L,
        cin=d_model, dff=d_ff, mxu_dtype=mxu_dtype)

    out2d = pl.pallas_call(
        kernel,
        out_shape=jax.ShapeDtypeStruct((B * L, d_out), jnp.float32),
        grid=(n_blocks,),
        in_specs=[
            pl.BlockSpec((batch_block, L, d_model), lambda i: (i, 0, 0)),
            pl.BlockSpec((3 * d_model, d_ff), lambda i: (0, 0)),
            pl.BlockSpec((1, d_ff), lambda i: (0, 0)),
            pl.BlockSpec((3 * d_ff, d_out), lambda i: (0, 0)),
            pl.BlockSpec((1, d_out), lambda i: (0, 0)),
            pl.BlockSpec((1, d_out), lambda i: (0, 0)),
            pl.BlockSpec((1, d_out), lambda i: (0, 0)),
        ],
        out_specs=pl.BlockSpec((batch_block * L, d_out), lambda i: (i, 0)),
        scratch_shapes=[
            pltpu.VMEM((batch_block * L, 3 * d_model), jnp.float32),
            pltpu.VMEM((batch_block * L, 3 * d_ff), jnp.float32),
        ],
        compiler_params=pltpu.CompilerParams(
            dimension_semantics=("parallel",)),
    )(x, w1cat, b1, w2cat, b2, gamma, beta)

    return out2d.reshape(B, L, d_out)


def ref_forward(x, w1, b1, w2, b2, gamma, beta, mxu_dtype=jnp.float32):
    """Pure-JAX reference with identical semantics (optionally bf16 MXU operands)."""
    def circ_conv3(inp, w, b):
        prev = jnp.roll(inp, 1, axis=1)
        nxt = jnp.roll(inp, -1, axis=1)
        y = (jnp.dot(prev.astype(mxu_dtype), w[0].astype(mxu_dtype),
                     preferred_element_type=jnp.float32)
             + jnp.dot(inp.astype(mxu_dtype), w[1].astype(mxu_dtype),
                       preferred_element_type=jnp.float32)
             + jnp.dot(nxt.astype(mxu_dtype), w[2].astype(mxu_dtype),
                       preferred_element_type=jnp.float32))
        return y + b
    h = jnp.maximum(circ_conv3(x, w1, b1), 0.0)
    y = circ_conv3(h, w2, b2)
    mean = y.mean(-1, keepdims=True)
    var = ((y - mean) ** 2).mean(-1, keepdims=True)
    return (y - mean) / jnp.sqrt(var + LN_EPS) * gamma + beta


if __name__ == "__main__":
    # Module hyper-params (small, consistent with the forward).
    d_model, d_ff, fd_num = 32, 64, 1
    d_out = d_model // (2 ** fd_num)          # 16
    B, L = 2, 8                               # batch, sequence length

    key = jax.random.PRNGKey(0)
    kx, k1, kb1, k2, kb2, kg, kb = jax.random.split(key, 7)

    x = jax.random.normal(kx, (B, L, d_model), jnp.float32)
    # Conv1d weights stored tap-major as (3, Cin, Cout) so the kernel does plain
    # matmuls on circularly shifted copies (equivalent to PyTorch (Cout, Cin, 3)).
    w1 = jax.random.normal(k1, (3, d_model, d_ff), jnp.float32) * 0.1
    b1 = jax.random.normal(kb1, (1, d_ff), jnp.float32) * 0.1
    w2 = jax.random.normal(k2, (3, d_ff, d_out), jnp.float32) * 0.1
    b2 = jax.random.normal(kb2, (1, d_out), jnp.float32) * 0.1
    gamma = 1.0 + 0.1 * jax.random.normal(kg, (1, d_out), jnp.float32)
    beta = 0.1 * jax.random.normal(kb, (1, d_out), jnp.float32)

    ref32 = ref_forward(x, w1, b1, w2, b2, gamma, beta)

    # (1) f32 path, whole batch folded into one grid step (max M for the MXU).
    out = jax.block_until_ready(
        convlayer_forward(x, w1, b1, w2, b2, gamma, beta))
    assert out.shape == (B, L, d_out)
    assert jnp.allclose(out, ref32, atol=1e-4, rtol=1e-4), "f32 fused mismatch"

    # (2) f32 path, 2 grid steps (batch_block=1): the v7x megacore-style split.
    out2 = jax.block_until_ready(
        convlayer_forward(x, w1, b1, w2, b2, gamma, beta, batch_block=1))
    assert jnp.allclose(out2, ref32, atol=1e-4, rtol=1e-4), "blocked mismatch"

    # (3) bf16 MXU operands (v6e/v7x); f32 accumulation + f32 LayerNorm.
    #     Compared against a reference that casts its matmul operands the same way.
    out_bf16 = jax.block_until_ready(
        convlayer_forward(x, w1, b1, w2, b2, gamma, beta,
                          mxu_dtype=jnp.bfloat16))
    ref_bf16 = ref_forward(x, w1, b1, w2, b2, gamma, beta,
                           mxu_dtype=jnp.bfloat16)
    assert jnp.allclose(out_bf16, ref_bf16, atol=1e-3, rtol=1e-3), "bf16 mismatch"

    print("KERNEL_OK")
</pallas_src>

<mosaic_0001>
module attributes {stable_mosaic.version = 11 : i64} {
  func.func @convlayer_kernel(%arg0: i32, %arg1: memref<2x8x32xf32, #tpu.memory_space<vmem>>, %arg2: memref<96x64xf32, #tpu.memory_space<vmem>>, %arg3: memref<1x64xf32, #tpu.memory_space<vmem>>, %arg4: memref<192x16xf32, #tpu.memory_space<vmem>>, %arg5: memref<1x16xf32, #tpu.memory_space<vmem>>, %arg6: memref<1x16xf32, #tpu.memory_space<vmem>>, %arg7: memref<1x16xf32, #tpu.memory_space<vmem>>, %arg8: memref<16x16xf32, #tpu.memory_space<vmem>>, %arg9: memref<16x96xf32, #tpu.memory_space<vmem>>, %arg10: memref<16x192xf32, #tpu.memory_space<vmem>>) attributes {dimension_semantics = [#tpu.dimension_semantics<parallel>], iteration_bounds = array<i64: 1>, scalar_prefetch = 0 : i64, scratch_operands = 2 : i64, tpu.core_type = #tpu.core_type<tc>, window_params = [{transform_indices = @transform_0, window_bounds = array<i64: 2, 8, 32>}, {pipeline_mode = #tpu.pipeline_mode<synchronous>, transform_indices = @transform_1, window_bounds = array<i64: 96, 64>}, {pipeline_mode = #tpu.pipeline_mode<synchronous>, transform_indices = @transform_2, window_bounds = array<i64: 1, 64>}, {pipeline_mode = #tpu.pipeline_mode<synchronous>, transform_indices = @transform_3, window_bounds = array<i64: 192, 16>}, {pipeline_mode = #tpu.pipeline_mode<synchronous>, transform_indices = @transform_4, window_bounds = array<i64: 1, 16>}, {pipeline_mode = #tpu.pipeline_mode<synchronous>, transform_indices = @transform_5, window_bounds = array<i64: 1, 16>}, {pipeline_mode = #tpu.pipeline_mode<synchronous>, transform_indices = @transform_6, window_bounds = array<i64: 1, 16>}, {transform_indices = @transform_7, window_bounds = array<i64: 16, 16>}]} {
    %c0 = arith.constant 0 : index
    %c0_0 = arith.constant 0 : index
    %c0_1 = arith.constant 0 : index
    %0 = vector.load %arg1[%c0, %c0_0, %c0_1] : memref<2x8x32xf32, #tpu.memory_space<vmem>>, vector<1x8x32xf32>
    %1 = vector.shape_cast %0 : vector<1x8x32xf32> to vector<8x32xf32>
    %c1_i32 = arith.constant 1 : i32
    %2 = tpu.dynamic_rotate %1 by %c1_i32 dim 0 : vector<8x32xf32>, i32 -> vector<8x32xf32>
    %c0_2 = arith.constant 0 : index
    %c0_3 = arith.constant 0 : index
    %3 = vector.load %arg9[%c0_2, %c0_3] : memref<16x96xf32, #tpu.memory_space<vmem>>, vector<8x32xf32>
    tpu.vector_store %arg9[%c0_2, %c0_3], %2 {strides = array<i32>} : memref<16x96xf32, #tpu.memory_space<vmem>>, vector<8x32xf32>,
    %c0_4 = arith.constant 0 : index
    %c32 = arith.constant 32 : index
    %4 = vector.load %arg9[%c0_4, %c32] : memref<16x96xf32, #tpu.memory_space<vmem>>, vector<8x32xf32>
    tpu.vector_store %arg9[%c0_4, %c32], %1 {strides = array<i32>} : memref<16x96xf32, #tpu.memory_space<vmem>>, vector<8x32xf32>,
    %c7_i32 = arith.constant 7 : i32
    %5 = tpu.dynamic_rotate %1 by %c7_i32 dim 0 : vector<8x32xf32>, i32 -> vector<8x32xf32>
    %c0_5 = arith.constant 0 : index
    %c64 = arith.constant 64 : index
    %6 = vector.load %arg9[%c0_5, %c64] : memref<16x96xf32, #tpu.memory_space<vmem>>, vector<8x32xf32>
    tpu.vector_store %arg9[%c0_5, %c64], %5 {strides = array<i32>} : memref<16x96xf32, #tpu.memory_space<vmem>>, vector<8x32xf32>,
    %c1 = arith.constant 1 : index
    %c0_6 = arith.constant 0 : index
    %c0_7 = arith.constant 0 : index
    %7 = vector.load %arg1[%c1, %c0_6, %c0_7] : memref<2x8x32xf32, #tpu.memory_space<vmem>>, vector<1x8x32xf32>
    %8 = vector.shape_cast %7 : vector<1x8x32xf32> to vector<8x32xf32>
    %c1_i32_8 = arith.constant 1 : i32
    %9 = tpu.dynamic_rotate %8 by %c1_i32_8 dim 0 : vector<8x32xf32>, i32 -> vector<8x32xf32>
    %c8 = arith.constant 8 : index
    %c0_9 = arith.constant 0 : index
    %10 = vector.load %arg9[%c8, %c0_9] : memref<16x96xf32, #tpu.memory_space<vmem>>, vector<8x32xf32>
    tpu.vector_store %arg9[%c8, %c0_9], %9 {strides = array<i32>} : memref<16x96xf32, #tpu.memory_space<vmem>>, vector<8x32xf32>,
    %c8_10 = arith.constant 8 : index
    %c32_11 = arith.constant 32 : index
    %11 = vector.load %arg9[%c8_10, %c32_11] : memref<16x96xf32, #tpu.memory_space<vmem>>, vector<8x32xf32>
    tpu.vector_store %arg9[%c8_10, %c32_11], %8 {strides = array<i32>} : memref<16x96xf32, #tpu.memory_space<vmem>>, vector<8x32xf32>,
    %c7_i32_12 = arith.constant 7 : i32
    %12 = tpu.dynamic_rotate %8 by %c7_i32_12 dim 0 : vector<8x32xf32>, i32 -> vector<8x32xf32>
    %c8_13 = arith.constant 8 : index
    %c64_14 = arith.constant 64 : index
    %13 = vector.load %arg9[%c8_13, %c64_14] : memref<16x96xf32, #tpu.memory_space<vmem>>, vector<8x32xf32>
    tpu.vector_store %arg9[%c8_13, %c64_14], %12 {strides = array<i32>} : memref<16x96xf32, #tpu.memory_space<vmem>>, vector<8x32xf32>,
    %c0_15 = arith.constant 0 : index
    %c0_16 = arith.constant 0 : index
    %14 = vector.load %arg9[%c0_15, %c0_16] : memref<16x96xf32, #tpu.memory_space<vmem>>, vector<16x96xf32>
    %c0_17 = arith.constant 0 : index
    %c0_18 = arith.constant 0 : index
    %15 = vector.load %arg2[%c0_17, %c0_18] : memref<96x64xf32, #tpu.memory_space<vmem>>, vector<96x64xf32>
    %cst = arith.constant dense<0.000000e+00> : vector<16x64xf32>
    %16 = tpu.matmul %14, %15, %cst {dimension_numbers = #tpu.dot_dimension_numbers<[1], [0], [0], [1], [0, 0, 1, 1], [], []>} : vector<16x96xf32>, vector<96x64xf32>, vector<16x64xf32> -> vector<16x64xf32>
    %c0_19 = arith.constant 0 : index
    %c0_20 = arith.constant 0 : index
    %17 = vector.load %arg3[%c0_19, %c0_20] : memref<1x64xf32, #tpu.memory_space<vmem>>, vector<1x64xf32>
    %18 = vector.broadcast %17 : vector<1x64xf32> to vector<16x64xf32>
    %19 = arith.addf %16, %18 : vector<16x64xf32>
    %cst_21 = arith.constant 0.000000e+00 : f32
    %20 = vector.broadcast %cst_21 : f32 to vector<16x64xf32>
    %21 = arith.maximumf %19, %20 : vector<16x64xf32>
    %c0_22 = arith.constant 0 : index
    %c64_23 = arith.constant 64 : index
    %22 = vector.load %arg10[%c0_22, %c64_23] : memref<16x192xf32, #tpu.memory_space<vmem>>, vector<16x64xf32>
    tpu.vector_store %arg10[%c0_22, %c64_23], %21 {strides = array<i32>} : memref<16x192xf32, #tpu.memory_space<vmem>>, vector<16x64xf32>,
    %c0_24 = arith.constant 0 : index
    %c64_25 = arith.constant 64 : index
    %23 = vector.load %arg10[%c0_24, %c64_25] : memref<16x192xf32, #tpu.memory_space<vmem>>, vector<8x64xf32>
    %c1_i32_26 = arith.constant 1 : i32
    %24 = tpu.dynamic_rotate %23 by %c1_i32_26 dim 0 : vector<8x64xf32>, i32 -> vector<8x64xf32>
    %c0_27 = arith.constant 0 : index
    %c0_28 = arith.constant 0 : index
    %25 = vector.load %arg10[%c0_27, %c0_28] : memref<16x192xf32, #tpu.memory_space<vmem>>, vector<8x64xf32>
    tpu.vector_store %arg10[%c0_27, %c0_28], %24 {strides = array<i32>} : memref<16x192xf32, #tpu.memory_space<vmem>>, vector<8x64xf32>,
    %c7_i32_29 = arith.constant 7 : i32
    %26 = tpu.dynamic_rotate %23 by %c7_i32_29 dim 0 : vector<8x64xf32>, i32 -> vector<8x64xf32>
    %c0_30 = arith.constant 0 : index
    %c128 = arith.constant 128 : index
    %27 = vector.load %arg10[%c0_30, %c128] : memref<16x192xf32, #tpu.memory_space<vmem>>, vector<8x64xf32>
    tpu.vector_store %arg10[%c0_30, %c128], %26 {strides = array<i32>} : memref<16x192xf32, #tpu.memory_space<vmem>>, vector<8x64xf32>,
    %c8_31 = arith.constant 8 : index
    %c64_32 = arith.constant 64 : index
    %28 = vector.load %arg10[%c8_31, %c64_32] : memref<16x192xf32, #tpu.memory_space<vmem>>, vector<8x64xf32>
    %c1_i32_33 = arith.constant 1 : i32
    %29 = tpu.dynamic_rotate %28 by %c1_i32_33 dim 0 : vector<8x64xf32>, i32 -> vector<8x64xf32>
    %c8_34 = arith.constant 8 : index
    %c0_35 = arith.constant 0 : index
    %30 = vector.load %arg10[%c8_34, %c0_35] : memref<16x192xf32, #tpu.memory_space<vmem>>, vector<8x64xf32>
    tpu.vector_store %arg10[%c8_34, %c0_35], %29 {strides = array<i32>} : memref<16x192xf32, #tpu.memory_space<vmem>>, vector<8x64xf32>,
    %c7_i32_36 = arith.constant 7 : i32
    %31 = tpu.dynamic_rotate %28 by %c7_i32_36 dim 0 : vector<8x64xf32>, i32 -> vector<8x64xf32>
    %c8_37 = arith.constant 8 : index
    %c128_38 = arith.constant 128 : index
    %32 = vector.load %arg10[%c8_37, %c128_38] : memref<16x192xf32, #tpu.memory_space<vmem>>, vector<8x64xf32>
    tpu.vector_store %arg10[%c8_37, %c128_38], %31 {strides = array<i32>} : memref<16x192xf32, #tpu.memory_space<vmem>>, vector<8x64xf32>,
    %c0_39 = arith.constant 0 : index
    %c0_40 = arith.constant 0 : index
    %33 = vector.load %arg10[%c0_39, %c0_40] : memref<16x192xf32, #tpu.memory_space<vmem>>, vector<16x192xf32>
    %c0_41 = arith.constant 0 : index
    %c0_42 = arith.constant 0 : index
    %34 = vector.load %arg4[%c0_41, %c0_42] : memref<192x16xf32, #tpu.memory_space<vmem>>, vector<192x16xf32>
    %cst_43 = arith.constant dense<0.000000e+00> : vector<16x16xf32>
    %35 = tpu.matmul %33, %34, %cst_43 {dimension_numbers = #tpu.dot_dimension_numbers<[1], [0], [0], [1], [0, 0, 1, 1], [], []>} : vector<16x192xf32>, vector<192x16xf32>, vector<16x16xf32> -> vector<16x16xf32>
    %c0_44 = arith.constant 0 : index
    %c0_45 = arith.constant 0 : index
    %36 = vector.load %arg5[%c0_44, %c0_45] : memref<1x16xf32, #tpu.memory_space<vmem>>, vector<1x16xf32>
    %37 = vector.broadcast %36 : vector<1x16xf32> to vector<16x16xf32>
    %38 = arith.addf %35, %37 : vector<16x16xf32>
    %cst_46 = arith.constant dense<0.000000e+00> : vector<16xf32>
    %39 = vector.multi_reduction <add>, %38, %cst_46 [1] : vector<16x16xf32> to vector<16xf32>
    %40 = vector.shape_cast %39 : vector<16xf32> to vector<16x1xf32>
    %cst_47 = arith.constant 1.600000e+01 : f32
    %41 = vector.broadcast %cst_47 : f32 to vector<16x1xf32>
    %42 = arith.divf %40, %41 : vector<16x1xf32>
    %43 = vector.broadcast %42 : vector<16x1xf32> to vector<16x16xf32>
    %44 = arith.subf %38, %43 : vector<16x16xf32>
    %45 = arith.mulf %44, %44 : vector<16x16xf32>
    %cst_48 = arith.constant dense<0.000000e+00> : vector<16xf32>
    %46 = vector.multi_reduction <add>, %45, %cst_48 [1] : vector<16x16xf32> to vector<16xf32>
    %47 = vector.shape_cast %46 : vector<16xf32> to vector<16x1xf32>
    %cst_49 = arith.constant 1.600000e+01 : f32
    %48 = vector.broadcast %cst_49 : f32 to vector<16x1xf32>
    %49 = arith.divf %47, %48 : vector<16x1xf32>
    %50 = vector.broadcast %42 : vector<16x1xf32> to vector<16x16xf32>
    %51 = arith.subf %38, %50 : vector<16x16xf32>
    %cst_50 = arith.constant 9.99999974E-6 : f32
    %52 = vector.broadcast %cst_50 : f32 to vector<16x1xf32>
    %53 = arith.addf %49, %52 : vector<16x1xf32>
    %54 = math.rsqrt %53 : vector<16x1xf32>
    %55 = vector.broadcast %54 : vector<16x1xf32> to vector<16x16xf32>
    %56 = arith.mulf %51, %55 : vector<16x16xf32>
    %c0_51 = arith.constant 0 : index
    %c0_52 = arith.constant 0 : index
    %57 = vector.load %arg6[%c0_51, %c0_52] : memref<1x16xf32, #tpu.memory_space<vmem>>, vector<1x16xf32>
    %58 = vector.broadcast %57 : vector<1x16xf32> to vector<16x16xf32>
    %59 = arith.mulf %56, %58 : vector<16x16xf32>
    %c0_53 = arith.constant 0 : index
    %c0_54 = arith.constant 0 : index
    %60 = vector.load %arg7[%c0_53, %c0_54] : memref<1x16xf32, #tpu.memory_space<vmem>>, vector<1x16xf32>
    %61 = vector.broadcast %60 : vector<1x16xf32> to vector<16x16xf32>
    %62 = arith.addf %59, %61 : vector<16x16xf32>
    %c0_55 = arith.constant 0 : index
    %c0_56 = arith.constant 0 : index
    %63 = vector.load %arg8[%c0_55, %c0_56] : memref<16x16xf32, #tpu.memory_space<vmem>>, vector<16x16xf32>
    tpu.vector_store %arg8[%c0_55, %c0_56], %62 {strides = array<i32>} : memref<16x16xf32, #tpu.memory_space<vmem>>, vector<16x16xf32>,
    return
  }
  func.func @transform_0(%arg0: i32) -> (i32, i32, i32) {
    %c0_i32 = arith.constant 0 : i32
    %c0_i32_0 = arith.constant 0 : i32
    %c0_i32_1 = arith.constant 0 : i32
    return %arg0, %c0_i32, %c0_i32_0 : i32, i32, i32
  }
  func.func @transform_1(%arg0: i32) -> (i32, i32) {
    %c0_i32 = arith.constant 0 : i32
    %c0_i32_0 = arith.constant 0 : i32
    %c0_i32_1 = arith.constant 0 : i32
    return %c0_i32, %c0_i32_0 : i32, i32
  }
  func.func @transform_2(%arg0: i32) -> (i32, i32) {
    %c0_i32 = arith.constant 0 : i32
    %c0_i32_0 = arith.constant 0 : i32
    %c0_i32_1 = arith.constant 0 : i32
    return %c0_i32, %c0_i32_0 : i32, i32
  }
  func.func @transform_3(%arg0: i32) -> (i32, i32) {
    %c0_i32 = arith.constant 0 : i32
    %c0_i32_0 = arith.constant 0 : i32
    %c0_i32_1 = arith.constant 0 : i32
    return %c0_i32, %c0_i32_0 : i32, i32
  }
  func.func @transform_4(%arg0: i32) -> (i32, i32) {
    %c0_i32 = arith.constant 0 : i32
    %c0_i32_0 = arith.constant 0 : i32
    %c0_i32_1 = arith.constant 0 : i32
    return %c0_i32, %c0_i32_0 : i32, i32
  }
  func.func @transform_5(%arg0: i32) -> (i32, i32) {
    %c0_i32 = arith.constant 0 : i32
    %c0_i32_0 = arith.constant 0 : i32
    %c0_i32_1 = arith.constant 0 : i32
    return %c0_i32, %c0_i32_0 : i32, i32
  }
  func.func @transform_6(%arg0: i32) -> (i32, i32) {
    %c0_i32 = arith.constant 0 : i32
    %c0_i32_0 = arith.constant 0 : i32
    %c0_i32_1 = arith.constant 0 : i32
    return %c0_i32, %c0_i32_0 : i32, i32
  }
  func.func @transform_7(%arg0: i32) -> (i32, i32) {
    %c0_i32 = arith.constant 0 : i32
    %c0_i32_0 = arith.constant 0 : i32
    return %arg0, %c0_i32 : i32, i32
  }
}

</mosaic_0001>

<bundles_post_ra>
// kernel: tpu_custom_call.1
= control target key start
LH: loop header
LB: loop body
LE: loop exit
PB: predicated region body
PF: predicated region fallthrough
CT: control target
= control target key end

     0   :  { %vm29_vm0 = vcmask 261120   ;;  %s518_s30 = smov 32   ;;  %s519_s17 = smov 64   ;;  %s732_s0 = inlined_call_operand.vmem [shape: f32[2,8,32], index: 0, kind: input, shape index: {}]   ;;  %s733_s1 = inlined_call_operand.vmem [shape: f32[96,64], index: 1, kind: input, shape index: {}]   ;;  %s734_s2 = inlined_call_operand.vmem [shape: f32[1,64], index: 2, kind: input, shape index: {}]   ;;  %s735_s3 = inlined_call_operand.vmem [shape: f32[192,16], index: 3, kind: input, shape index: {}]   ;;  %s736_s4 = inlined_call_operand.vmem [shape: f32[1,16], index: 4, kind: input, shape index: {}]   ;;  %s737_s5 = inlined_call_operand.vmem [shape: f32[1,16], index: 5, kind: input, shape index: {}]   ;;  %s738_s6 = inlined_call_operand.vmem [shape: f32[1,16], index: 6, kind: input, shape index: {}]   ;;  %s739_s7 = inlined_call_operand.hbm [shape: f32[16,16], index: 7, kind: output, shape index: {}]  }
   0x1   :  { %v27_v0 = vld [vmem:[%s732_s0] sm:$0xff]  ;;  %v374_v1 = vld [vmem:[%s732_s0 + $0x8] sm:$0xff]  ;;  %v63_v8 = vld [vmem:[%s733_s1 + $0x10] sm:$0xff] }
   0x2   :  { %v61_v2 = vld [vmem:[%s733_s1] sm:$0xff]  ;;  %32 = vrot.lane.b32.xlu0 %v27_v0, %s518_s30  ;;  %v28_v3 = vrot.slane %v27_v0, 7  ;;  %v46_v4 = vrot.slane %v374_v1, 7  ;;  %49 = vrot.lane.b32.xlu1 %v374_v1, %s518_s30  ;;  %v37_v5 = vrot.slane %v27_v0, 1  ;;  %v53_v6 = vrot.slane %v374_v1, 1  ;;  %v62_v7 = vld [vmem:[%s733_s1 + $0x8] sm:$0xff] }
   0x3   :  { %v424_v9 = vpack.c.bf16 %v62_v7, %v61_v2  ;;  %v64_v10 = vld [vmem:[%s733_s1 + $0x18] sm:$0xff]  ;;  %v65_v12 = vld [vmem:[%s733_s1 + $0x20] sm:$0xff]  ;;  %v66_v13 = vld [vmem:[%s733_s1 + $0x28] sm:$0xff] }
   0x4   :  { %v428_v11 = vpack.c.bf16 %v64_v10, %v63_v8  ;;  %30 = vst.msk [vmem:[#allocation2] sm:$0xff] %vm29_vm0, %v28_v3  ;;  %47 = vst.msk [vmem:[#allocation2 + $0x8] sm:$0xff] %vm29_vm0, %v46_v4 }
   0x5   :  { %425 = vmatprep.subr.bf16.mxu0 %v424_v9 }
   0x6   :  { %39 = vrot.lane.b32.xlu0 %v37_v5, %s519_s17  ;;  %55 = vrot.lane.b32.xlu1 %v53_v6, %s519_s17 }
   0x7   :  { %12 = vsyncpa [#allocation5], 0  ;;  %427 = vmatpush3.bf16.msra.mxu0 %v424_v9  ;;  %v432_v14 = vpack.c.bf16 %v66_v13, %v65_v12  ;;  %v67_v15 = vld [vmem:[%s733_s1 + $0x30] sm:$0xff]  ;;  %v68_v16 = vld [vmem:[%s733_s1 + $0x38] sm:$0xff]  ;;  %vm35_vm1 = vcmask 523520   ;;  %vm42_vm2 = vcmask 785920  }
   0x8   :  { %429 = vmatprep.subr.bf16.mxu0 %v428_v11  ;;  %v436_v17 = vpack.c.bf16 %v68_v16, %v67_v15  ;;  %v69_v18 = vld [vmem:[%s733_s1 + $0x40] sm:$0xff]  ;;  %v70_v19 = vld [vmem:[%s733_s1 + $0x48] sm:$0xff]  ;;  %v71_v21 = vld [vmem:[%s733_s1 + $0x50] sm:$0xff]  ;;  %vm80_vm3 = vcmask 785408   ;;  %v520_v38 = vmov 0.0|0.0   ;;  %vm172_vm4 = vcmask 1048064  }
   0x9   :  { %v440_v20 = vpack.c.bf16 %v70_v19, %v69_v18  ;;  %v72_v22 = vld [vmem:[%s733_s1 + $0x58] sm:$0xff]  ;;  %v375_v30 = vld [vmem:[%s734_s2] ss:$0 sm:$0xff]  ;;  %v199_v35 = vld [vmem:[%s735_s3 + $0x8] sm:$0xff]  ;;  %448 = vmatprep.subr.bf16.mxu1 %v520_v38  ;;  %vm181_vm5 = vcmask 523264   ;;  %vm310_vm6 = vcmask 130048  }
   0xa   :  { %v444_v23 = vpack.c.bf16 %v72_v22, %v71_v21  ;;  %v198_v34 = vld [vmem:[%s735_s3] sm:$0xff]  ;;  %v200_v36 = vld [vmem:[%s735_s3 + $0x10] sm:$0xff]  ;;  %v201_v40 = vld [vmem:[%s735_s3 + $0x18] sm:$0xff]  ;;  %s521_s9 = smov [#allocation4]  }
   0xb   :  { %431 = vmatpush3.bf16.msra.mxu0 %v428_v11  ;;  %v449_v39 = vpack.c.bf16 %v199_v35, %v198_v34  ;;  %v452_v43 = vpack.c.bf16 %v201_v40, %v200_v36  ;;  %v202_v44 = vld [vmem:[%s735_s3 + $0x20] sm:$0xff]  ;;  %v203_v45 = vld [vmem:[%s735_s3 + $0x28] sm:$0xff]  ;;  %v204_v47 = vld [vmem:[%s735_s3 + $0x30] sm:$0xff]  ;;  %s363_s10 = sshll.u32 %s521_s9, 4  ;;  %s364_s10 = int_to_ptr.vmem [resolvable:$true] %s363_s10 }
   0xc   :  { %433 = vmatprep.subr.bf16.mxu0 %v432_v14  ;;  %v455_v46 = vpack.c.bf16 %v203_v45, %v202_v44  ;;  %v205_v48 = vld [vmem:[%s735_s3 + $0x38] sm:$0xff]  ;;  %v206_v50 = vld [vmem:[%s735_s3 + $0x40] sm:$0xff]  ;;  %v207_v51 = vld [vmem:[%s735_s3 + $0x48] sm:$0xff]  ;;  %s494_s11 = scalar_lea.vmem %s364_s10, 256  ;;  %p499_p1 = scmp.lt.s32.totalorder %s364_s10, %s364_s10 }
   0xd   :  { %450 = vmatpush1.bf16.msra.mxu1 %v449_v39  ;;  %v458_v49 = vpack.c.bf16 %v205_v48, %v204_v47  ;;  %v461_v52 = vpack.c.bf16 %v207_v51, %v206_v50  ;;  %v208_v53 = vld [vmem:[%s735_s3 + $0x50] sm:$0xff]  ;;  %v209_v54 = vld [vmem:[%s735_s3 + $0x58] sm:$0xff]  ;;  %v210_v56 = vld [vmem:[%s735_s3 + $0x60] sm:$0xff]  ;;  %p495_p0 = scmp.ne.s32.totalorder %s364_s10, %s494_s11  ;;  %p500_p2 = scmp.lt.s32.totalorder %s494_s11, %s494_s11 }
   0xe   :  { %451 = vmatprep.subr.bf16.mxu1 %v520_v38  ;;  %v464_v55 = vpack.c.bf16 %v209_v54, %v208_v53  ;;  %v211_v57 = vld [vmem:[%s735_s3 + $0x68] sm:$0xff]  ;;  %v212_v59 = vld [vmem:[%s735_s3 + $0x70] sm:$0xff]  ;;  %v213_v60 = vld [vmem:[%s735_s3 + $0x78] sm:$0xff] }
   0xf   :  { %435 = vmatpush3.bf16.msra.mxu0 %v432_v14  ;;  %v467_v58 = vpack.c.bf16 %v211_v57, %v210_v56  ;;  %v470_v61 = vpack.c.bf16 %v213_v60, %v212_v59  ;;  %v214_v62 = vld [vmem:[%s735_s3 + $0x80] sm:$0xff]  ;;  %v215_v63 = vld [vmem:[%s735_s3 + $0x88] sm:$0xff]  ;;  %v216_v1 = vld [vmem:[%s735_s3 + $0x90] sm:$0xff]  ;;  %p501_p3 = por %p500_p2, %p499_p1 }
  0x10   :  { %437 = vmatprep.subr.bf16.mxu0 %v436_v17  ;;  %v473_v0 = vpack.c.bf16 %v215_v63, %v214_v62  ;;  %v217_v2 = vld [vmem:[%s735_s3 + $0x98] sm:$0xff]  ;;  %v218_v4 = vld [vmem:[%s735_s3 + $0xa0] sm:$0xff]  ;;  %v219_v5 = vld [vmem:[%s735_s3 + $0xa8] sm:$0xff] }
  0x11   :  { %453 = vmatpush1.bf16.msra.mxu1 %v452_v43  ;;  %v476_v3 = vpack.c.bf16 %v217_v2, %v216_v1  ;;  %v479_v6 = vpack.c.bf16 %v219_v5, %v218_v4  ;;  %v220_v7 = vld [vmem:[%s735_s3 + $0xb0] sm:$0xff]  ;;  %v221_v8 = vld [vmem:[%s735_s3 + $0xb8] sm:$0xff]  ;;  %v381_v50 = vld [vmem:[%s737_s5] ss:$0 sm:$0xff]  ;;  %p502_p4 = pnand %p501_p3, %p495_p0 }
  0x12   :  { %454 = vmatprep.subr.bf16.mxu1 %v520_v38  ;;  %v482_v11 = vpack.c.bf16 %v221_v8, %v220_v7 }
  0x13   :  { %439 = vmatpush3.bf16.msra.mxu0 %v436_v17 }
  0x14   :  { %441 = vmatprep.subr.bf16.mxu0 %v440_v20 }
  0x15   :  { %456 = vmatpush1.bf16.msra.mxu1 %v455_v46 }
  0x16   :  { %457 = vmatprep.subr.bf16.mxu1 %v520_v38 }
  0x17   :  { %443 = vmatpush3.bf16.msra.mxu0 %v440_v20 }
  0x18   :  { %445 = vmatprep.subr.bf16.mxu0 %v444_v23 }
  0x19   :  { %459 = vmatpush1.bf16.msra.mxu1 %v458_v49 }
  0x1a   :  { %460 = vmatprep.subr.bf16.mxu1 %v520_v38 }
  0x1b   :  { %447 = vmatpush3.bf16.msra.mxu0 %v444_v23 }
  0x1d   :  { %462 = vmatpush1.bf16.msra.mxu1 %v461_v52  ;;  %v382_v52 = vld [vmem:[%s738_s6] ss:$0 sm:$0xff] }
  0x1e   :  { %463 = vmatprep.subr.bf16.mxu1 %v520_v38 }
  0x21   :  { %465 = vmatpush1.bf16.msra.mxu1 %v464_v55 }
  0x22   :  { %466 = vmatprep.subr.bf16.mxu1 %v520_v38 }
  0x25   :  { %468 = vmatpush1.bf16.msra.mxu1 %v467_v58 }
  0x26   :  { %469 = vmatprep.subr.bf16.mxu1 %v520_v38 }
  0x29   :  { %471 = vmatpush1.bf16.msra.mxu1 %v470_v61 }
  0x2a   :  { %472 = vmatprep.subr.bf16.mxu1 %v520_v38 }
  0x2d   :  { %474 = vmatpush1.bf16.msra.mxu1 %v473_v0 }
  0x2e   :  { %475 = vmatprep.subr.bf16.mxu1 %v520_v38 }
  0x31   :  { %477 = vmatpush1.bf16.msra.mxu1 %v476_v3 }
  0x32   :  { %478 = vmatprep.subr.bf16.mxu1 %v520_v38 }
  0x35   :  { %480 = vmatpush1.bf16.msra.mxu1 %v479_v6 }
  0x36   :  { %481 = vmatprep.subr.bf16.mxu1 %v520_v38 }
  0x39   :  { %483 = vmatpush1.bf16.msra.mxu1 %v482_v11 }
  0x74   :  { %v33_v24 = vpop.permute.xlu0 %32  ;;  %v50_v25 = vpop.permute.xlu1 %49 }
  0x75   :  { %36 = vst.msk [vmem:[#allocation2] sm:$0xff] %vm35_vm1, %v33_v24  ;;  %52 = vst.msk [vmem:[#allocation2 + $0x8] sm:$0xff] %vm35_vm1, %v50_v25  ;;  %v378_v24 = vld [vmem:[%s736_s4] ss:$0 sm:$0xff] }
  0x78   :  { %v40_v26 = vpop.permute.xlu0 %39  ;;  %v56_v27 = vpop.permute.xlu1 %55 }
  0x79   :  { %43 = vst.msk [vmem:[#allocation2] sm:$0xff] %vm42_vm2, %v40_v26  ;;  %58 = vst.msk [vmem:[#allocation2 + $0x8] sm:$0xff] %vm42_vm2, %v56_v27 }
  0x80   :  { %v59_v28 = vld [vmem:[#allocation2] sm:$0xff]  ;;  %v60_v29 = vld [vmem:[#allocation2 + $0x8] sm:$0xff] }
  0x81   :  { %421 = vmatprep.mubr.msk.f32.mxu0 %vm80_vm3, %v59_v28 }
  0x82   :  { %422 = vmatmul.mubr.msk.f32.vlgmr.msra.gmra.mrb[0].mxu0 %vm80_vm3, %v60_v29 }
 0x155   :  { %v423_v31 = vpop.f32.mrb[0].mxu0 }
 0x156   :  { %v159_v32 = vadd.f32 %v423_v31, %v375_v30  ;;  %v153_v33 = vpop.f32.mrb[1].mxu0 }
 0x157   :  { %v154_v37 = vadd.f32 %v375_v30, %v153_v33 }
 0x158   :  { %v163_v41 = vmax.f32 %v159_v32, 0.0 }
 0x159   :  { %v162_v42 = vmax.f32 %v154_v37, 0.0 }
 0x15a   :  { %168 = vrot.lane.b32.xlu1 %v163_v41, %s519_s17 }
 0x15b   :  { %166 = vrot.lane.b32.xlu0 %v162_v42, %s519_s17 }
 0x1cc   :  { %v169_v9 = vpop.permute.xlu1 %168 }
 0x1cd   :  { %174 = vst.msk [vmem:[#allocation3 + $0x10] sm:$0xff] %vm172_vm4, %v169_v9  ;;  %v167_v10 = vpop.permute.xlu0 %166 }
 0x1ce   :  { %173 = vst.msk [vmem:[#allocation3] sm:$0xff] %vm172_vm4, %v167_v10 }
 0x1d4   :  { %v185_v12 = vld [vmem:[#allocation3 + $0x10] sm:$0xff] }
 0x1d5   :  { %187 = vrot.lane.b32.xlu1 %v185_v12, %s519_s17  ;;  %v175_v13 = vld [vmem:[#allocation3] sm:$0xff] }
 0x1d6   :  { %177 = vrot.lane.b32.xlu0 %v175_v13, %s519_s17 }
 0x247   :  { %v188_v14 = vpop.permute.xlu1 %187 }
 0x248   :  { %v190_v15 = vrot.slane %v188_v14, 7  ;;  %v192_v16 = vrot.slane %v188_v14, 1  ;;  %v178_v17 = vpop.permute.xlu0 %177 }
 0x249   :  { %v180_v18 = vrot.slane %v178_v17, 7  ;;  %v183_v19 = vrot.slane %v178_v17, 1 }
 0x24a   :  { %191 = vst.msk [vmem:[#allocation3 + $0x10] sm:$0xff] %vm181_vm5, %v190_v15  ;;  %193 = vst.msk [vmem:[#allocation3 + $0x18] sm:$0xff] %vm181_vm5, %v192_v16 }
 0x24b   :  { %182 = vst.msk [vmem:[#allocation3] sm:$0xff] %vm181_vm5, %v180_v18  ;;  %184 = vst.msk [vmem:[#allocation3 + $0x8] sm:$0xff] %vm181_vm5, %v183_v19 }
 0x251   :  { %v197_v22 = vld [vmem:[#allocation3 + $0x18] sm:$0xff]  ;;  %v196_v23 = vld [vmem:[#allocation3 + $0x10] sm:$0xff] }
 0x252   :  { %v195_v20 = vld [vmem:[#allocation3 + $0x8] sm:$0xff]  ;;  %v194_v21 = vld [vmem:[#allocation3] sm:$0xff] }
 0x253   :  { %379 = vmatprep.mubr.msk.f32.mxu1 %vm181_vm5, %v195_v20 }
 0x254   :  { %300 = vmatmul.mubr.f32.vlgmr.msra.gmra.mrb[0].mxu1 %v194_v21 }
 0x255   :  { %380 = vmatprep.mubr.msk.f32.mxu1 %vm181_vm5, %v197_v22 }
 0x258   :  { %305 = vmatmul.mubr.f32.gmra.mrb[2].mxu1 %v196_v23 }
 0x327   :  { %v301_v25 = vpop.f32.mrb[0].mxu1 }
 0x328   :  { %v302_v26 = vadd.f32 %v378_v24, %v301_v25  ;;  %v303_v27 = vpop.f32.mrb[1].mxu1 }
 0x32a   :  { %v311_v28 = vsel %vm310_vm6, %v302_v26, 0.0 }
 0x32b   :  { %v306_v29 = vpop.f32.mrb[2].mxu1  ;;  %312 = vadd.xlane.f32.xlu0 %v311_v28 }
 0x32c   :  { %v307_v30 = vadd.f32 %v378_v24, %v306_v29  ;;  %v308_v31 = vpop.f32.mrb[3].mxu1 }
 0x32e   :  { %v314_v32 = vsel %vm310_vm6, %v307_v30, 0.0 }
 0x32f   :  { %315 = vadd.xlane.f32.xlu1 %v314_v32 }
 0x3b8   :  { %v313_v33 = vpop.xlane.xlu0 %312 }
 0x3b9   :  { %v318_v34 = vmul.f32 0.0625, %v313_v33 }
 0x3bb   :  { %v320_v35 = vsub.f32 %v302_v26, %v318_v34 }
 0x3bc   :  { %v316_v36 = vpop.xlane.xlu1 %315 }
 0x3bd   :  { %v319_v37 = vmul.f32 0.0625, %v316_v36  ;;  %v322_v38 = vmul.f32 %v320_v35, %v320_v35 }
 0x3bf   :  { %v321_v39 = vsub.f32 %v307_v30, %v319_v37  ;;  %v324_v40 = vsel %vm310_vm6, %v322_v38, 0.0 }
 0x3c0   :  { %325 = vadd.xlane.f32.xlu0 %v324_v40 }
 0x3c1   :  { %v323_v41 = vmul.f32 %v321_v39, %v321_v39 }
 0x3c3   :  { %v327_v42 = vsel %vm310_vm6, %v323_v41, 0.0 }
 0x3c4   :  { %328 = vadd.xlane.f32.xlu0 %v327_v42 }
 0x44d   :  { %v326_v43 = vpop.xlane.xlu0 %325 }
 0x44e   :  { %v330_v44 = vmul.f32 0.0625, %v326_v43 }
 0x450   :  { %v332_v45 = vadd.f32 1e-05, %v330_v44 }
 0x451   :  { %v329_v46 = vpop.xlane.xlu0 %328 }
 0x452   :  { %490 = vrsqrt.f32 %v332_v45  ;;  %v331_v47 = vmul.f32 0.0625, %v329_v46 }
 0x454   :  { %v333_v48 = vadd.f32 1e-05, %v331_v47 }
 0x456   :  { %492 = vrsqrt.f32 %v333_v48 }
 0x45c   :  { %v491_v49 = vpop.eup %490 }
 0x45d   :  { %v336_v51 = vmul.f32 %v491_v49, %v320_v35 }
 0x45f   :  { %v345_v53 = vmul.f32 %v381_v50, %v336_v51 }
 0x460   :  { %v493_v54 = vpop.eup %492 }
 0x461   :  { %v337_v55 = vmul.f32 %v493_v54, %v321_v39  ;;  %v354_v56 = vadd.f32 %v382_v52, %v345_v53 }
 0x463   :  { %v346_v57 = vmul.f32 %v381_v50, %v337_v55  ;;  %356 = vst.msk [vmem:[#allocation4] sm:$0xff] %vm310_vm6, %v354_v56 }
 0x465   :  { %v355_v58 = vadd.f32 %v382_v52, %v346_v57 }
 0x467   :  { %357 = vst.msk [vmem:[#allocation4 + $0x8] sm:$0xff] %vm310_vm6, %v355_v58 }
 0x468   :  { %505 = shalt.err (!%p502_p4)
}
 0x469   :  { %s506_s0 = scalar_lea.hbm %s739_s7, 256 }
 0x46a   :  { %p507_p5 = scmp.ne.s32.totalorder %s739_s7, %s506_s0  ;;  %p510_p6 = scmp.lt.u32.totalorder %s506_s0, %s739_s7 }
 0x46c   :  { %p512_p7 = pnand %p510_p6, %p507_p5 }
 0x46e   :  { %515 = shalt.err (!%p512_p7)
}
 0x46f   :  { %s522_s15 = smov 128   ;;  %s523_s16 = smov 8  }
 0x470   :  { %369 = dma.vmem_to_hbm [thread:$0]  %s364_s10, 256, %s739_s7, [#allocation5], %s522_s15, %s522_s15, %s523_s16  }
 0x471   :  { %516 = dma.done.wait [#allocation5], 256  }
 0x472   :  { %517 = vsyncadd [#allocation5], 4294967040 }
 0x473   :  { %373 = vsyncpa [#allocation5], 1 }

</bundles_post_ra>
